<compile_context>
chip_gen: v7x
topology: tpu7x:2x2x1
jax: 0.10.0
libtpu: 0.0.40
codegen_flags: <defaults>
</compile_context>

<pallas_src>
import jax
import jax.numpy as jnp
from jax import lax
from jax.experimental import pallas as pl
from jax.experimental.pallas import tpu as pltpu

LOG_STD_MAX = 2.0
LOG_STD_MIN = -5.0


def _round_up(x, m):
    return (x + m - 1) // m * m


# ------------------------------ Pallas kernel ------------------------------- #

def _make_actor_skip_kernel(n_blocks, action_dim):
    """Fused: (Linear+ReLU) x n_blocks -> skip concat -> fused head -> log_std xform.

    Ref order: obs, (w_i, b_i) * n_blocks, w_head, b_head, out.
    obs / w_i / w_head are bf16; b_i / b_head / out are f32.
    """

    def kernel(*refs):
        obs_ref = refs[0]
        block_refs = refs[1:1 + 2 * n_blocks]
        wh_ref = refs[1 + 2 * n_blocks]     # bf16 [cat_dim, n_out_pad] (fc_mean ‖ fc_logstd ‖ 0-pad)
        bh_ref = refs[2 + 2 * n_blocks]     # f32  [1, n_out_pad]
        out_ref = refs[3 + 2 * n_blocks]    # f32  [TB, n_out_pad]

        obs = obs_ref[...]                                  # bf16 [TB, input_dim]
        x = obs
        segs = [obs.astype(jnp.float32)]
        for i in range(n_blocks):
            w = block_refs[2 * i][...]                      # bf16 [in, hid]
            b = block_refs[2 * i + 1][...]                  # f32  [1, hid]
            h = jnp.maximum(
                jnp.dot(x, w, preferred_element_type=jnp.float32) + b, 0.0)
            segs.append(h)                                  # keep f32 for concat
            x = h.astype(jnp.bfloat16)                      # bf16 input to next MXU pass

        # Skip connection built in-register; cat_dim <= 128 here -> one lane column,
        # then a single MXU pass against the fused (zero-padded) head weight.
        cat = jnp.concatenate(segs, axis=1).astype(jnp.bfloat16)   # [TB, cat_dim]
        heads = (jnp.dot(cat, wh_ref[...], preferred_element_type=jnp.float32)
                 + bh_ref[...])                             # f32 [TB, n_out_pad]

        # log_std = LOG_STD_MIN + 0.5*(LOG_STD_MAX-LOG_STD_MIN)*(tanh(.)+1) applied to
        # the log_std lanes; mean lanes pass through. Padding lanes are sliced away
        # outside, so their value is irrelevant.
        ls_t = (LOG_STD_MIN
                + 0.5 * (LOG_STD_MAX - LOG_STD_MIN) * (jnp.tanh(heads) + 1.0))
        col = lax.broadcasted_iota(jnp.int32, heads.shape, 1)
        out_ref[...] = jnp.where(col < action_dim, heads, ls_t)

    return kernel


# --------------------------------- wrapper ----------------------------------- #

def actor_skip_forward(params, obs):
    """Mirror of ActorSkip.forward(obs) -> (mean, log_std). One pallas_call."""
    B, input_dim = obs.shape
    blocks = params["blocks"]
    n_blocks = len(blocks)
    wh = params["w_head"]                       # f32 [cat_dim, 2*A]
    bh = params["b_head"]                       # f32 [1, 2*A]
    cat_dim, two_a = wh.shape
    action_dim = two_a // 2

    # Batch tiling: sublane-aligned tile, batch becomes a "parallel" grid axis
    # (no-op on 1-TC v5e/v6e, uses both TensorCores on v7x once B > TB).
    tb = min(128, _round_up(B, 8))
    b_pad = _round_up(B, tb)
    if b_pad != B:
        obs = jnp.pad(obs, ((0, b_pad - B), (0, 0)))

    # Lane-dense output slab: pad head width to a multiple of 128 lanes with zeros.
    n_out = max(128, _round_up(two_a, 128))
    wh_p = jnp.zeros((cat_dim, n_out), jnp.bfloat16).at[:, :two_a].set(
        wh.astype(jnp.bfloat16))
    bh_p = jnp.zeros((1, n_out), jnp.float32).at[:, :two_a].set(bh)

    obs_bf = obs.astype(jnp.bfloat16)

    kernel = _make_actor_skip_kernel(n_blocks, action_dim)

    flat_inputs = [obs_bf]
    in_specs = [pl.BlockSpec((tb, input_dim), lambda i: (i, 0))]
    for (w, b) in blocks:
        flat_inputs += [w.astype(jnp.bfloat16), b]
        in_specs += [pl.BlockSpec(w.shape, lambda i: (0, 0)),
                     pl.BlockSpec(b.shape, lambda i: (0, 0))]
    flat_inputs += [wh_p, bh_p]
    in_specs += [pl.BlockSpec((cat_dim, n_out), lambda i: (0, 0)),
                 pl.BlockSpec((1, n_out), lambda i: (0, 0))]

    out = pl.pallas_call(
        kernel,
        out_shape=jax.ShapeDtypeStruct((b_pad, n_out), jnp.float32),
        grid=(b_pad // tb,),
        in_specs=in_specs,
        out_specs=pl.BlockSpec((tb, n_out), lambda i: (i, 0)),
        compiler_params=pltpu.CompilerParams(
            dimension_semantics=("parallel",),
            # All weights stay resident; trivially within VMEM at these shapes.
            # Set vmem_limit_bytes explicitly if hidden_dim is scaled up (v7x has
            # half the VMEM of v5e/v6e).
        ),
    )(*flat_inputs)

    mean = out[:B, :action_dim]
    log_std = out[:B, action_dim:two_a]
    return mean, log_std


# --------------------------------- params ------------------------------------ #

def init_params(key, input_dim, hidden_dim, n_hidden_layers, action_dim):
    """Deterministic parameter init (shapes match ActorSkip.__init__).

    fc_mean / fc_logstd are stored fused as w_head [cat_dim, 2*A], b_head [1, 2*A].
    Master params stay f32; the wrapper casts matmul inputs to bf16.
    """
    params = {"blocks": []}
    dims = [input_dim] + [hidden_dim] * (n_hidden_layers + 1)
    for i in range(n_hidden_layers + 1):
        key, k1, k2 = jax.random.split(key, 3)
        w = jax.random.normal(k1, (dims[i], dims[i + 1]), jnp.float32) * 0.1
        b = jax.random.normal(k2, (1, dims[i + 1]), jnp.float32) * 0.1
        params["blocks"].append((w, b))
    cat_dim = input_dim + (n_hidden_layers + 1) * hidden_dim
    key, k1, k2 = jax.random.split(key, 3)
    params["w_head"] = jax.random.normal(k1, (cat_dim, 2 * action_dim), jnp.float32) * 0.1
    params["b_head"] = jax.random.normal(k2, (1, 2 * action_dim), jnp.float32) * 0.1
    return params


# ---------------------------- pure-JAX reference ------------------------------ #

def _ref_forward(params, obs):
    """Mirrors the kernel's numerics: bf16 matmul inputs, f32 accumulation."""
    obs_bf = obs.astype(jnp.bfloat16)
    x = obs_bf
    segs = [obs_bf.astype(jnp.float32)]
    for (w, b) in params["blocks"]:
        h = jnp.maximum(
            jnp.dot(x, w.astype(jnp.bfloat16),
                    preferred_element_type=jnp.float32) + b, 0.0)
        segs.append(h)
        x = h.astype(jnp.bfloat16)
    cat = jnp.concatenate(segs, axis=1).astype(jnp.bfloat16)
    heads = jnp.dot(cat, params["w_head"].astype(jnp.bfloat16),
                    preferred_element_type=jnp.float32) + params["b_head"]
    a = heads.shape[1] // 2
    mean = heads[:, :a]
    log_std = heads[:, a:]
    log_std = LOG_STD_MIN + 0.5 * (LOG_STD_MAX - LOG_STD_MIN) * (jnp.tanh(log_std) + 1.0)
    return mean, log_std


# ----------------------------------- main ------------------------------------- #

if __name__ == "__main__":
    B = 256               # batch of stacked vectorized-env states (sublane/MXU aligned)
    INPUT_DIM = 16        # flattened observation dim
    HIDDEN_DIM = 32       # args.actor_hidden_dim
    N_HIDDEN_LAYERS = 2   # args.N_hidden_layers
    ACTION_DIM = 4        # prod(env.single_action_space.shape)

    key = jax.random.PRNGKey(0)
    key, kp, ko = jax.random.split(key, 3)
    params = init_params(kp, INPUT_DIM, HIDDEN_DIM, N_HIDDEN_LAYERS, ACTION_DIM)
    obs = jax.random.normal(ko, (B, INPUT_DIM), jnp.float32)

    forward = jax.jit(actor_skip_forward)
    mean, log_std = forward(params, obs)
    jax.block_until_ready(mean)
    jax.block_until_ready(log_std)

    # Correctness check against a pure-JAX reference with identical numerics.
    r_mean, r_log_std = _ref_forward(params, obs)
    assert mean.shape == (B, ACTION_DIM) and log_std.shape == (B, ACTION_DIM)
    assert jnp.allclose(mean, r_mean, atol=1e-2, rtol=1e-2)
    assert jnp.allclose(log_std, r_log_std, atol=1e-2, rtol=1e-2)

    # TODO(synk): sample_action/get_action (Normal rsample + tanh squashing) are
    # sampling utilities outside the module's forward pass and are not kernelized.
    # TODO(synk): per-env-step rollout callers should wrap this jitted forward in a
    # lax.scan / batch many env states per call to amortize dispatch overhead.

    print("KERNEL_OK")
</pallas_src>

<mosaic_0001>
module attributes {stable_mosaic.version = 11 : i64} {
  func.func @kernel(%arg0: i32, %arg1: memref<128x16xbf16, #tpu.memory_space<vmem>>, %arg2: memref<16x32xbf16, #tpu.memory_space<vmem>>, %arg3: memref<1x32xf32, #tpu.memory_space<vmem>>, %arg4: memref<32x32xbf16, #tpu.memory_space<vmem>>, %arg5: memref<1x32xf32, #tpu.memory_space<vmem>>, %arg6: memref<32x32xbf16, #tpu.memory_space<vmem>>, %arg7: memref<1x32xf32, #tpu.memory_space<vmem>>, %arg8: memref<112x128xbf16, #tpu.memory_space<vmem>>, %arg9: memref<1x128xf32, #tpu.memory_space<vmem>>, %arg10: memref<128x128xf32, #tpu.memory_space<vmem>>) attributes {dimension_semantics = [#tpu.dimension_semantics<parallel>], iteration_bounds = array<i64: 2>, scalar_prefetch = 0 : i64, scratch_operands = 0 : i64, tpu.core_type = #tpu.core_type<tc>, window_params = [{transform_indices = @transform_0, window_bounds = array<i64: 128, 16>}, {pipeline_mode = #tpu.pipeline_mode<synchronous>, transform_indices = @transform_1, window_bounds = array<i64: 16, 32>}, {pipeline_mode = #tpu.pipeline_mode<synchronous>, transform_indices = @transform_2, window_bounds = array<i64: 1, 32>}, {pipeline_mode = #tpu.pipeline_mode<synchronous>, transform_indices = @transform_3, window_bounds = array<i64: 32, 32>}, {pipeline_mode = #tpu.pipeline_mode<synchronous>, transform_indices = @transform_4, window_bounds = array<i64: 1, 32>}, {pipeline_mode = #tpu.pipeline_mode<synchronous>, transform_indices = @transform_5, window_bounds = array<i64: 32, 32>}, {pipeline_mode = #tpu.pipeline_mode<synchronous>, transform_indices = @transform_6, window_bounds = array<i64: 1, 32>}, {pipeline_mode = #tpu.pipeline_mode<synchronous>, transform_indices = @transform_7, window_bounds = array<i64: 112, 128>}, {pipeline_mode = #tpu.pipeline_mode<synchronous>, transform_indices = @transform_8, window_bounds = array<i64: 1, 128>}, {transform_indices = @transform_9, window_bounds = array<i64: 128, 128>}]} {
    %c0 = arith.constant 0 : index
    %c0_0 = arith.constant 0 : index
    %0 = vector.load %arg1[%c0, %c0_0] : memref<128x16xbf16, #tpu.memory_space<vmem>>, vector<128x16xbf16>
    %1 = arith.extf %0 : vector<128x16xbf16> to vector<128x16xf32>
    %c0_1 = arith.constant 0 : index
    %c0_2 = arith.constant 0 : index
    %2 = vector.load %arg2[%c0_1, %c0_2] : memref<16x32xbf16, #tpu.memory_space<vmem>>, vector<16x32xbf16>
    %c0_3 = arith.constant 0 : index
    %c0_4 = arith.constant 0 : index
    %3 = vector.load %arg3[%c0_3, %c0_4] : memref<1x32xf32, #tpu.memory_space<vmem>>, vector<1x32xf32>
    %cst = arith.constant dense<0.000000e+00> : vector<128x32xf32>
    %4 = tpu.matmul %0, %2, %cst {dimension_numbers = #tpu.dot_dimension_numbers<[1], [0], [0], [1], [0, 0, 1, 1], [], []>} : vector<128x16xbf16>, vector<16x32xbf16>, vector<128x32xf32> -> vector<128x32xf32>
    %5 = vector.broadcast %3 : vector<1x32xf32> to vector<128x32xf32>
    %6 = arith.addf %4, %5 : vector<128x32xf32>
    %cst_5 = arith.constant 0.000000e+00 : f32
    %7 = vector.broadcast %cst_5 : f32 to vector<128x32xf32>
    %8 = arith.maximumf %6, %7 : vector<128x32xf32>
    %9 = arith.truncf %8 : vector<128x32xf32> to vector<128x32xbf16>
    %c0_6 = arith.constant 0 : index
    %c0_7 = arith.constant 0 : index
    %10 = vector.load %arg4[%c0_6, %c0_7] : memref<32x32xbf16, #tpu.memory_space<vmem>>, vector<32x32xbf16>
    %c0_8 = arith.constant 0 : index
    %c0_9 = arith.constant 0 : index
    %11 = vector.load %arg5[%c0_8, %c0_9] : memref<1x32xf32, #tpu.memory_space<vmem>>, vector<1x32xf32>
    %cst_10 = arith.constant dense<0.000000e+00> : vector<128x32xf32>
    %12 = tpu.matmul %9, %10, %cst_10 {dimension_numbers = #tpu.dot_dimension_numbers<[1], [0], [0], [1], [0, 0, 1, 1], [], []>} : vector<128x32xbf16>, vector<32x32xbf16>, vector<128x32xf32> -> vector<128x32xf32>
    %13 = vector.broadcast %11 : vector<1x32xf32> to vector<128x32xf32>
    %14 = arith.addf %12, %13 : vector<128x32xf32>
    %cst_11 = arith.constant 0.000000e+00 : f32
    %15 = vector.broadcast %cst_11 : f32 to vector<128x32xf32>
    %16 = arith.maximumf %14, %15 : vector<128x32xf32>
    %17 = arith.truncf %16 : vector<128x32xf32> to vector<128x32xbf16>
    %c0_12 = arith.constant 0 : index
    %c0_13 = arith.constant 0 : index
    %18 = vector.load %arg6[%c0_12, %c0_13] : memref<32x32xbf16, #tpu.memory_space<vmem>>, vector<32x32xbf16>
    %c0_14 = arith.constant 0 : index
    %c0_15 = arith.constant 0 : index
    %19 = vector.load %arg7[%c0_14, %c0_15] : memref<1x32xf32, #tpu.memory_space<vmem>>, vector<1x32xf32>
    %cst_16 = arith.constant dense<0.000000e+00> : vector<128x32xf32>
    %20 = tpu.matmul %17, %18, %cst_16 {dimension_numbers = #tpu.dot_dimension_numbers<[1], [0], [0], [1], [0, 0, 1, 1], [], []>} : vector<128x32xbf16>, vector<32x32xbf16>, vector<128x32xf32> -> vector<128x32xf32>
    %21 = vector.broadcast %19 : vector<1x32xf32> to vector<128x32xf32>
    %22 = arith.addf %20, %21 : vector<128x32xf32>
    %cst_17 = arith.constant 0.000000e+00 : f32
    %23 = vector.broadcast %cst_17 : f32 to vector<128x32xf32>
    %24 = arith.maximumf %22, %23 : vector<128x32xf32>
    %25 = tpu.concatenate %1, %8, %16, %24 in 1 : vector<128x16xf32>, vector<128x32xf32>, vector<128x32xf32>, vector<128x32xf32> -> vector<128x112xf32>
    %26 = arith.truncf %25 : vector<128x112xf32> to vector<128x112xbf16>
    %c0_18 = arith.constant 0 : index
    %c0_19 = arith.constant 0 : index
    %27 = vector.load %arg8[%c0_18, %c0_19] : memref<112x128xbf16, #tpu.memory_space<vmem>>, vector<112x128xbf16>
    %cst_20 = arith.constant dense<0.000000e+00> : vector<128x128xf32>
    %28 = tpu.matmul %26, %27, %cst_20 {dimension_numbers = #tpu.dot_dimension_numbers<[1], [0], [0], [1], [0, 0, 1, 1], [], []>} : vector<128x112xbf16>, vector<112x128xbf16>, vector<128x128xf32> -> vector<128x128xf32>
    %c0_21 = arith.constant 0 : index
    %c0_22 = arith.constant 0 : index
    %29 = vector.load %arg9[%c0_21, %c0_22] : memref<1x128xf32, #tpu.memory_space<vmem>>, vector<1x128xf32>
    %30 = vector.broadcast %29 : vector<1x128xf32> to vector<128x128xf32>
    %31 = arith.addf %28, %30 : vector<128x128xf32>
    %32 = math.tanh %31 : vector<128x128xf32>
    %cst_23 = arith.constant 1.000000e+00 : f32
    %33 = vector.broadcast %cst_23 : f32 to vector<128x128xf32>
    %34 = arith.addf %32, %33 : vector<128x128xf32>
    %cst_24 = arith.constant 3.500000e+00 : f32
    %35 = vector.broadcast %cst_24 : f32 to vector<128x128xf32>
    %36 = arith.mulf %35, %34 : vector<128x128xf32>
    %cst_25 = arith.constant -5.000000e+00 : f32
    %37 = vector.broadcast %cst_25 : f32 to vector<128x128xf32>
    %38 = arith.addf %37, %36 : vector<128x128xf32>
    %39 = tpu.iota {dimensions = array<i32: 1>} : vector<128x128xi32>
    %c4_i32 = arith.constant 4 : i32
    %40 = vector.broadcast %c4_i32 : i32 to vector<128x128xi32>
    %41 = arith.cmpi slt, %39, %40 : vector<128x128xi32>
    %42 = arith.select %41, %31, %38 : vector<128x128xi1>, vector<128x128xf32>
    %c0_26 = arith.constant 0 : index
    %c0_27 = arith.constant 0 : index
    %43 = vector.load %arg10[%c0_26, %c0_27] : memref<128x128xf32, #tpu.memory_space<vmem>>, vector<128x128xf32>
    tpu.vector_store %arg10[%c0_26, %c0_27], %42 {strides = array<i32>} : memref<128x128xf32, #tpu.memory_space<vmem>>, vector<128x128xf32>,
    return
  }
  func.func @transform_0(%arg0: i32) -> (i32, i32) {
    %c0_i32 = arith.constant 0 : i32
    %c0_i32_0 = arith.constant 0 : i32
    return %arg0, %c0_i32 : i32, i32
  }
  func.func @transform_1(%arg0: i32) -> (i32, i32) {
    %c0_i32 = arith.constant 0 : i32
    %c0_i32_0 = arith.constant 0 : i32
    %c0_i32_1 = arith.constant 0 : i32
    return %c0_i32, %c0_i32_0 : i32, i32
  }
  func.func @transform_2(%arg0: i32) -> (i32, i32) {
    %c0_i32 = arith.constant 0 : i32
    %c0_i32_0 = arith.constant 0 : i32
    %c0_i32_1 = arith.constant 0 : i32
    return %c0_i32, %c0_i32_0 : i32, i32
  }
  func.func @transform_3(%arg0: i32) -> (i32, i32) {
    %c0_i32 = arith.constant 0 : i32
    %c0_i32_0 = arith.constant 0 : i32
    %c0_i32_1 = arith.constant 0 : i32
    return %c0_i32, %c0_i32_0 : i32, i32
  }
  func.func @transform_4(%arg0: i32) -> (i32, i32) {
    %c0_i32 = arith.constant 0 : i32
    %c0_i32_0 = arith.constant 0 : i32
    %c0_i32_1 = arith.constant 0 : i32
    return %c0_i32, %c0_i32_0 : i32, i32
  }
  func.func @transform_5(%arg0: i32) -> (i32, i32) {
    %c0_i32 = arith.constant 0 : i32
    %c0_i32_0 = arith.constant 0 : i32
    %c0_i32_1 = arith.constant 0 : i32
    return %c0_i32, %c0_i32_0 : i32, i32
  }
  func.func @transform_6(%arg0: i32) -> (i32, i32) {
    %c0_i32 = arith.constant 0 : i32
    %c0_i32_0 = arith.constant 0 : i32
    %c0_i32_1 = arith.constant 0 : i32
    return %c0_i32, %c0_i32_0 : i32, i32
  }
  func.func @transform_7(%arg0: i32) -> (i32, i32) {
    %c0_i32 = arith.constant 0 : i32
    %c0_i32_0 = arith.constant 0 : i32
    %c0_i32_1 = arith.constant 0 : i32
    return %c0_i32, %c0_i32_0 : i32, i32
  }
  func.func @transform_8(%arg0: i32) -> (i32, i32) {
    %c0_i32 = arith.constant 0 : i32
    %c0_i32_0 = arith.constant 0 : i32
    %c0_i32_1 = arith.constant 0 : i32
    return %c0_i32, %c0_i32_0 : i32, i32
  }
  func.func @transform_9(%arg0: i32) -> (i32, i32) {
    %c0_i32 = arith.constant 0 : i32
    %c0_i32_0 = arith.constant 0 : i32
    return %arg0, %c0_i32 : i32, i32
  }
}

</mosaic_0001>

<bundles_post_ra>
// kernel: actor_skip_forward.1
= control target key start
LH: loop header
LB: loop body
LE: loop exit
PB: predicated region body
PF: predicated region fallthrough
CT: control target
= control target key end

     0   :  { %s1940_s30 = smov 0   ;;  %s2356_s0 = inlined_call_operand.vmem [shape: bf16[256,16], index: 0, kind: input, shape index: {}]   ;;  %s2357_s1 = inlined_call_operand.vmem [shape: bf16[16,32], index: 1, kind: input, shape index: {}]   ;;  %s2358_s2 = inlined_call_operand.vmem [shape: f32[1,32], index: 2, kind: input, shape index: {}]   ;;  %s2359_s3 = inlined_call_operand.vmem [shape: bf16[32,32], index: 3, kind: input, shape index: {}]   ;;  %s2360_s4 = inlined_call_operand.vmem [shape: f32[1,32], index: 4, kind: input, shape index: {}]   ;;  %s2361_s5 = inlined_call_operand.vmem [shape: bf16[32,32], index: 5, kind: input, shape index: {}]   ;;  %s2362_s6 = inlined_call_operand.vmem [shape: f32[1,32], index: 6, kind: input, shape index: {}]   ;;  %s2363_s7 = inlined_call_operand.vmem [shape: bf16[112,128], index: 7, kind: input, shape index: {}]   ;;  %s2364_s8 = inlined_call_operand.vmem [shape: f32[1,128], index: 8, kind: input, shape index: {}]   ;;  %s2365_s9 = inlined_call_operand.vmem [shape: f32[256,128], index: 9, kind: output, shape index: {}]  }
   0x1 LB: > { %s1489_s10 = sadd.s32 4294967295, %s1885_s30   ;;  %p1493_p0 = scmp.ge.s32.totalorder %s1885_s30, 1  ;;  %s1885_s30 = sphi %s1940_s30, %s19_s30  }
   0x2   : > { %p288_p1 = scmp.lt.s32.totalorder %s1885_s30, 3 }
   0x4   : > { %p289_p2 = pnand %p1493_p0, %p288_p1 }
   0x5   : > { %v1819_v0 = vld [vmem:[%s2357_s1] sm:$0xff] (!%p289_p2)   ;;  %s1494_s13 = sshll.u32 (!%p289_p2), %s1489_s10, 4  ;;  %vm424_vm0 = vcmask (!%p289_p2), 130048   ;;  %v1829_v10 = vld [vmem:[%s2359_s3 + $0x8] sm:$0xff] (!%p289_p2)   ;;  %vm593_vm1 = vcmask (!%p289_p2), 261120   ;;  %s1887_s24 = smov (!%p289_p2), 16  }
   0x6   : > { %292 = sbr.rel (%p289_p2) target bundleno = 1064 (0x428), region = 56  ;;  %p325_p3 = scmp.lt.s32.totalorder (!%p289_p2), %s1494_s13, 31  ;;  %1600 = vmatprep.subr.bf16.mxu0 (!%p289_p2), %v1819_v0  ;;  %v1828_v9 = vld [vmem:[%s2359_s3] sm:$0xff] (!%p289_p2)   ;;  %v1831_v46 = vld [vmem:[%s2361_s5 + $0x8] sm:$0xff] (!%p289_p2)   ;;  %vm1107_vm2 = vcmask (!%p289_p2), 392192   ;;  %vm1124_vm3 = vcmask (!%p289_p2), 654336  }
   0x7   : > { %1601 = vmatpush3.bf16.msra.mxu0 (!%p289_p2), %v1819_v0  ;;  %1618 = vmatprep.subr.bf16.mxu1 (!%p289_p2), %v1828_v9  ;;  %v1998_v11 = vld [vmem:[%s2358_s2] ss:$0 sm:$0xff] (!%p289_p2)  ;;  %s1888_s11 = smov (!%p289_p2), 48   ;;  %s1889_s10 = smov (!%p289_p2), 80   ;;  %vm1212_vm4 = vcmask (!%p289_p2), 916480  }
   0x8   : > { %1619 = vmatpush3.bf16.msra.mxu1 (!%p289_p2), %v1828_v9  ;;  %v1830_v42 = vld [vmem:[%s2361_s5] sm:$0xff] (!%p289_p2)  }
   0x9   : > { %1620 = vmatprep.subr.bf16.mxu1 (!%p289_p2), %v1829_v10  ;;  %1638 = vmatprep.subr.bf16.mxu0 (!%p289_p2), %v1830_v42 }
   0xc   : > { %1621 = vmatpush3.bf16.msra.mxu1 (!%p289_p2), %v1829_v10 }
   0xd   : > { %s2367_s13 = smov (!%p325_p3, %s1494_s13), 31 }
   0xe   : > { %s1495_s14 = sshll.u32 %s2367_s13, 2  ;;  %s1497_s12 = sshll.u32 %s2367_s13, 3 }
   0xf   : > { %s328_s17 = scalar_lea.vmem %s2356_s0, %s1495_s14  ;;  %s2270_s16 = scalar_lea.vmem %s2365_s9, %s1497_s12 }
  0x10   : > { %v1957_v1 = vld [vmem:[%s328_s17] sm:$0xff]   ;;  %v1959_v2 = vld [vmem:[%s328_s17 + $0x8] sm:$0xff]   ;;  %v1961_v3 = vld [vmem:[%s328_s17 + $0x10] sm:$0xff]  }
  0x11   : > { %1602 = vmatprep.mubr.msk.bf16.mxu0 %vm424_vm0, %v1957_v1  ;;  %v1969_v4 = vld [vmem:[%s328_s17 + $0x18] sm:$0xff]   ;;  %v1971_v5 = vld [vmem:[%s328_s17 + $0x20] sm:$0xff]   ;;  %v1977_v6 = vld [vmem:[%s328_s17 + $0x28] sm:$0xff]  }
  0x12   : > { %1603 = vmatmul.mubr.msk.bf16.vlgmr.msra.gmra.mrb[0].mxu0 %vm424_vm0, %v1959_v2  ;;  %v1979_v7 = vld [vmem:[%s328_s17 + $0x30] sm:$0xff]   ;;  %v1985_v8 = vld [vmem:[%s328_s17 + $0x38] sm:$0xff]  }
  0x13   : > { %1606 = vmatprep.mubr.msk.bf16.mxu0 %vm424_vm0, %v1961_v3  ;;  %1639 = vmatpush3.bf16.msra.mxu0 %v1830_v42 }
  0x14   : > { %1640 = vmatprep.subr.bf16.mxu0 %v1831_v46 }
  0x17   : > { %1641 = vmatpush3.bf16.msra.mxu0 %v1831_v46 }
  0x1a   : > { %1607 = vmatmul.mubr.msk.bf16.gmra.mrb[4].mxu0 %vm424_vm0, %v1969_v4 }
  0x1b   : > { %1610 = vmatprep.mubr.msk.bf16.mxu0 %vm424_vm0, %v1971_v5 }
  0x22   : > { %1611 = vmatmul.mubr.msk.bf16.gmra.mrb[8].mxu0 %vm424_vm0, %v1977_v6 }
  0x23   : > { %1614 = vmatprep.mubr.msk.bf16.mxu0 %vm424_vm0, %v1979_v7 }
  0x2a   : > { %1615 = vmatmul.mubr.msk.bf16.gmra.mrb[12].mxu0 %vm424_vm0, %v1985_v8 }
  0xe5   : > { %v1604_v12 = vpop.f32.mrb[0].mxu0 }
  0xe6   : > { %v492_v13 = vadd.f32 %v1604_v12, %v1998_v11  ;;  %v483_v14 = vpop.f32.mrb[1].mxu0 }
  0xe7   : > { %v484_v15 = vadd.f32 %v1998_v11, %v483_v14  ;;  %v1605_v16 = vpop.f32.mrb[2].mxu0 }
  0xe8   : > { %v495_v17 = vadd.f32 %v1605_v16, %v1998_v11  ;;  %v486_v18 = vpop.f32.mrb[3].mxu0  ;;  %v548_v20 = vmax.f32 %v492_v13, 0.0 }
  0xe9   : > { %v487_v19 = vadd.f32 %v1998_v11, %v486_v18  ;;  %v546_v22 = vmax.f32 %v484_v15, 0.0 }
  0xea   : > { %v549_v21 = vmax.f32 %v495_v17, 0.0 }
  0xeb   : > { %v547_v23 = vmax.f32 %v487_v19, 0.0 }
  0xec   : > { %v563_v24 = vpack.c.bf16 %v549_v21, %v548_v20  ;;  %v1699_v25 = vpack.i.bf16 %v549_v21, %v548_v20 }
  0xed   : > { %v1704_v26 = vpack.i.bf16 %v547_v23, %v546_v22  ;;  %v1608_v27 = vpop.f32.mrb[4].mxu0  ;;  %v562_v28 = vpack.c.bf16 %v547_v23, %v546_v22  ;;  %v2043_v23 = vld [vmem:[%s2360_s4] ss:$0 sm:$0xff] }
  0xee   : > { %v508_v29 = vadd.f32 %v1608_v27, %v1998_v11  ;;  %1700 = vrot.lane.b32.xlu0 %v1699_v25, %s1887_s24  ;;  %v499_v30 = vpop.f32.mrb[5].mxu0 }
  0xef   : > { %v500_v31 = vadd.f32 %v1998_v11, %v499_v30  ;;  %v1609_v32 = vpop.f32.mrb[6].mxu0  ;;  %1622 = vmatprep.mubr.msk.bf16.mxu1 %vm593_vm1, %v562_v28 }
  0xf0   : > { %v511_v33 = vadd.f32 %v1609_v32, %v1998_v11  ;;  %v502_v34 = vpop.f32.mrb[7].mxu0  ;;  %1623 = vmatmul.mubr.msk.bf16.vlgmr.msra.gmra.mrb[0].mxu1 %vm593_vm1, %v563_v24  ;;  %v552_v36 = vmax.f32 %v508_v29, 0.0 }
  0xf1   : > { %v503_v35 = vadd.f32 %v1998_v11, %v502_v34  ;;  %v550_v38 = vmax.f32 %v500_v31, 0.0 }
  0xf2   : > { %v553_v37 = vmax.f32 %v511_v33, 0.0  ;;  %1705 = vrot.lane.b32.xlu0 %v1704_v26, %s1887_s24 }
  0xf3   : > { %v551_v39 = vmax.f32 %v503_v35, 0.0 }
  0xf4   : > { %v565_v40 = vpack.c.bf16 %v553_v37, %v552_v36  ;;  %v1709_v41 = vpack.i.bf16 %v553_v37, %v552_v36 }
  0xf5   : > { %v1714_v43 = vpack.i.bf16 %v551_v39, %v550_v38  ;;  %v564_v44 = vpack.c.bf16 %v551_v39, %v550_v38  ;;  %v1612_v45 = vpop.f32.mrb[8].mxu0 }
  0xf6   : > { %v524_v47 = vadd.f32 %v1612_v45, %v1998_v11  ;;  %1710 = vrot.lane.b32.xlu1 %v1709_v41, %s1887_s24  ;;  %v515_v48 = vpop.f32.mrb[9].mxu0 }
  0xf7   : > { %v516_v49 = vadd.f32 %v1998_v11, %v515_v48  ;;  %v1613_v50 = vpop.f32.mrb[10].mxu0  ;;  %1715 = vrot.lane.b32.xlu0 %v1714_v43, %s1887_s24  ;;  %1626 = vmatprep.mubr.msk.bf16.mxu1 %vm593_vm1, %v564_v44 }
  0xf8   : > { %v527_v51 = vadd.f32 %v1613_v50, %v1998_v11  ;;  %v518_v52 = vpop.f32.mrb[11].mxu0  ;;  %1627 = vmatmul.mubr.msk.bf16.gmra.mrb[4].mxu1 %vm593_vm1, %v565_v40  ;;  %v556_v54 = vmax.f32 %v524_v47, 0.0 }
  0xf9   : > { %v519_v53 = vadd.f32 %v1998_v11, %v518_v52  ;;  %v554_v56 = vmax.f32 %v516_v49, 0.0 }
  0xfa   : > { %v557_v55 = vmax.f32 %v527_v51, 0.0 }
  0xfb   : > { %v555_v57 = vmax.f32 %v519_v53, 0.0 }
  0xfc   : > { %v1719_v58 = vpack.i.bf16 %v557_v55, %v556_v54  ;;  %v567_v59 = vpack.c.bf16 %v557_v55, %v556_v54 }
  0xfd   : > { %v1724_v60 = vpack.i.bf16 %v555_v57, %v554_v56  ;;  %v566_v61 = vpack.c.bf16 %v555_v57, %v554_v56  ;;  %v1616_v62 = vpop.f32.mrb[12].mxu0 }
  0xfe   : > { %v540_v63 = vadd.f32 %v1616_v62, %v1998_v11  ;;  %1720 = vrot.lane.b32.xlu1 %v1719_v58, %s1887_s24  ;;  %v531_v0 = vpop.f32.mrb[13].mxu0 }
  0xff   : > { %v532_v9 = vadd.f32 %v1998_v11, %v531_v0  ;;  %v1617_v10 = vpop.f32.mrb[14].mxu0  ;;  %1725 = vrot.lane.b32.xlu0 %v1724_v60, %s1887_s24  ;;  %1630 = vmatprep.mubr.msk.bf16.mxu1 %vm593_vm1, %v566_v61 }
 0x100   : > { %v543_v12 = vadd.f32 %v1617_v10, %v1998_v11  ;;  %v534_v13 = vpop.f32.mrb[15].mxu0  ;;  %1631 = vmatmul.mubr.msk.bf16.gmra.mrb[8].mxu1 %vm593_vm1, %v567_v59  ;;  %v560_v15 = vmax.f32 %v540_v63, 0.0 }
 0x101   : > { %v535_v14 = vadd.f32 %v1998_v11, %v534_v13  ;;  %v558_v17 = vmax.f32 %v532_v9, 0.0 }
 0x102   : > { %v561_v16 = vmax.f32 %v543_v12, 0.0 }
 0x103   : > { %v559_v18 = vmax.f32 %v535_v14, 0.0 }
 0x104   : > { %v2034_v19 = vpack.i.bf16 %v561_v16, %v560_v15  ;;  %v569_v20 = vpack.c.bf16 %v561_v16, %v560_v15 }
 0x105   : > { %v2036_v21 = vpack.i.bf16 %v559_v18, %v558_v17  ;;  %v568_v22 = vpack.c.bf16 %v559_v18, %v558_v17 }
 0x107   : > { %1634 = vmatprep.mubr.msk.bf16.mxu1 %vm593_vm1, %v568_v22 }
 0x108   : > { %1635 = vmatmul.mubr.msk.bf16.gmra.mrb[12].mxu1 %vm593_vm1, %v569_v20 }
 0x1c3   : > { %v1624_v11 = vpop.f32.mrb[0].mxu1 }
 0x1c4   : > { %v661_v24 = vadd.f32 %v1624_v11, %v2043_v23  ;;  %v652_v25 = vpop.f32.mrb[1].mxu1 }
 0x1c5   : > { %v653_v26 = vadd.f32 %v2043_v23, %v652_v25  ;;  %v1625_v27 = vpop.f32.mrb[2].mxu1 }
 0x1c6   : > { %v664_v28 = vadd.f32 %v1625_v27, %v2043_v23  ;;  %v655_v29 = vpop.f32.mrb[3].mxu1  ;;  %v717_v31 = vmax.f32 %v661_v24, 0.0 }
 0x1c7   : > { %v656_v30 = vadd.f32 %v2043_v23, %v655_v29  ;;  %v715_v33 = vmax.f32 %v653_v26, 0.0 }
 0x1c8   : > { %v718_v32 = vmax.f32 %v664_v28, 0.0 }
 0x1c9   : > { %v716_v34 = vmax.f32 %v656_v30, 0.0 }
 0x1ca   : > { %v1729_v35 = vpack.i.bf16 %v718_v32, %v717_v31  ;;  %v732_v36 = vpack.c.bf16 %v718_v32, %v717_v31 }
 0x1cb   : > { %v1734_v37 = vpack.i.bf16 %v716_v34, %v715_v33  ;;  %v731_v38 = vpack.c.bf16 %v716_v34, %v715_v33  ;;  %v1628_v39 = vpop.f32.mrb[4].mxu1  ;;  %v1832_v34 = vld [vmem:[%s2363_s7] sm:$0xff]  }
 0x1cc   : > { %v677_v40 = vadd.f32 %v1628_v39, %v2043_v23  ;;  %1730 = vrot.lane.b32.xlu1 %v1729_v35, %s1888_s11  ;;  %v668_v41 = vpop.f32.mrb[5].mxu1  ;;  %1658 = vmatprep.subr.bf16.mxu1 %v1832_v34  ;;  %v1834_v35 = vld [vmem:[%s2363_s7 + $0x10] sm:$0xff]  }
 0x1cd   : > { %v669_v42 = vadd.f32 %v2043_v23, %v668_v41  ;;  %v1629_v43 = vpop.f32.mrb[6].mxu1  ;;  %1642 = vmatprep.mubr.msk.bf16.mxu0 %vm593_vm1, %v731_v38  ;;  %1659 = vmatpush3.bf16.msra.mxu1 %v1832_v34  ;;  %v1837_v38 = vld [vmem:[%s2363_s7 + $0x28] sm:$0xff]   ;;  %v1838_v39 = vld [vmem:[%s2363_s7 + $0x30] sm:$0xff]  }
 0x1ce   : > { %v680_v44 = vadd.f32 %v1629_v43, %v2043_v23  ;;  %v671_v45 = vpop.f32.mrb[7].mxu1  ;;  %1643 = vmatmul.mubr.msk.bf16.vlgmr.msra.gmra.mrb[16].mxu0 %vm593_vm1, %v732_v36  ;;  %v721_v47 = vmax.f32 %v677_v40, 0.0  ;;  %v1835_v36 = vld [vmem:[%s2363_s7 + $0x18] sm:$0xff]   ;;  %v2105_v40 = vld [vmem:[%s2362_s6] ss:$0 sm:$0xff] }
 0x1cf   : > { %v672_v46 = vadd.f32 %v2043_v23, %v671_v45  ;;  %v719_v49 = vmax.f32 %v669_v42, 0.0 }
 0x1d0   : > { %v722_v48 = vmax.f32 %v680_v44, 0.0  ;;  %1735 = vrot.lane.b32.xlu1 %v1734_v37, %s1888_s11  ;;  %v1836_v37 = vld [vmem:[%s2363_s7 + $0x20] sm:$0xff]  }
 0x1d1   : > { %v720_v50 = vmax.f32 %v672_v46, 0.0 }
 0x1d2   : > { %v1739_v51 = vpack.i.bf16 %v722_v48, %v721_v47  ;;  %v734_v52 = vpack.c.bf16 %v722_v48, %v721_v47 }
 0x1d3   : > { %v1744_v53 = vpack.i.bf16 %v720_v50, %v719_v49  ;;  %v733_v54 = vpack.c.bf16 %v720_v50, %v719_v49  ;;  %v1632_v55 = vpop.f32.mrb[8].mxu1 }
 0x1d4   : > { %v693_v56 = vadd.f32 %v1632_v55, %v2043_v23  ;;  %v684_v57 = vpop.f32.mrb[9].mxu1  ;;  %1740 = vrot.lane.b32.xlu1 %v1739_v51, %s1888_s11 }
 0x1d5   : > { %v685_v58 = vadd.f32 %v2043_v23, %v684_v57  ;;  %v1633_v59 = vpop.f32.mrb[10].mxu1  ;;  %1745 = vrot.lane.b32.xlu0 %v1744_v53, %s1888_s11  ;;  %1646 = vmatprep.mubr.msk.bf16.mxu0 %vm593_vm1, %v733_v54 }
 0x1d6   : > { %v696_v60 = vadd.f32 %v1633_v59, %v2043_v23  ;;  %v687_v61 = vpop.f32.mrb[11].mxu1  ;;  %1647 = vmatmul.mubr.msk.bf16.gmra.mrb[20].mxu0 %vm593_vm1, %v734_v52  ;;  %v725_v63 = vmax.f32 %v693_v56, 0.0 }
 0x1d7   : > { %v688_v62 = vadd.f32 %v2043_v23, %v687_v61  ;;  %v723_v9 = vmax.f32 %v685_v58, 0.0 }
 0x1d8   : > { %v726_v0 = vmax.f32 %v696_v60, 0.0 }
 0x1d9   : > { %v724_v10 = vmax.f32 %v688_v62, 0.0 }
 0x1da   : > { %v2065_v12 = vpack.i.bf16 %v726_v0, %v725_v63  ;;  %v736_v13 = vpack.c.bf16 %v726_v0, %v725_v63 }
 0x1db   : > { %v2067_v14 = vpack.i.bf16 %v724_v10, %v723_v9  ;;  %v735_v15 = vpack.c.bf16 %v724_v10, %v723_v9  ;;  %v1636_v16 = vpop.f32.mrb[12].mxu1 }
 0x1dc   : > { %v709_v17 = vadd.f32 %v1636_v16, %v2043_v23  ;;  %v700_v18 = vpop.f32.mrb[13].mxu1 }
 0x1dd   : > { %v701_v20 = vadd.f32 %v2043_v23, %v700_v18  ;;  %v1637_v22 = vpop.f32.mrb[14].mxu1  ;;  %1650 = vmatprep.mubr.msk.bf16.mxu0 %vm593_vm1, %v735_v15 }
 0x1de   : > { %v712_v11 = vadd.f32 %v1637_v22, %v2043_v23  ;;  %v703_v24 = vpop.f32.mrb[15].mxu1  ;;  %1651 = vmatmul.mubr.msk.bf16.gmra.mrb[24].mxu0 %vm593_vm1, %v736_v13  ;;  %v729_v26 = vmax.f32 %v709_v17, 0.0 }
 0x1df   : > { %v704_v25 = vadd.f32 %v2043_v23, %v703_v24  ;;  %v727_v28 = vmax.f32 %v701_v20, 0.0  ;;  %v1833_v23 = vld [vmem:[%s2363_s7 + $0x8] sm:$0xff]  }
 0x1e0   : > { %v730_v27 = vmax.f32 %v712_v11, 0.0  ;;  %1660 = vmatprep.subr.bf16.mxu1 %v1833_v23 }
 0x1e1   : > { %v728_v29 = vmax.f32 %v704_v25, 0.0  ;;  %1661 = vmatpush3.bf16.msra.mxu1 %v1833_v23 }
 0x1e2   : > { %v2075_v30 = vpack.i.bf16 %v730_v27, %v729_v26  ;;  %v738_v31 = vpack.c.bf16 %v730_v27, %v729_v26  ;;  %1662 = vmatprep.subr.bf16.mxu1 %v1834_v35 }
 0x1e3   : > { %v2077_v32 = vpack.i.bf16 %v728_v29, %v727_v28  ;;  %v737_v33 = vpack.c.bf16 %v728_v29, %v727_v28 }
 0x1e5   : > { %1654 = vmatprep.mubr.msk.bf16.mxu0 %vm593_vm1, %v737_v33  ;;  %1663 = vmatpush3.bf16.msra.mxu1 %v1834_v35 }
 0x1e6   : > { %1655 = vmatmul.mubr.msk.bf16.gmra.mrb[28].mxu0 %vm593_vm1, %v738_v31  ;;  %1664 = vmatprep.subr.bf16.mxu1 %v1835_v36 }
 0x1e9   : > { %1665 = vmatpush3.bf16.msra.mxu1 %v1835_v36 }
 0x1ea   : > { %1666 = vmatprep.subr.bf16.mxu1 %v1836_v37 }
 0x1ed   : > { %1667 = vmatpush3.bf16.msra.mxu1 %v1836_v37 }
 0x1ee   : > { %1668 = vmatprep.subr.bf16.mxu1 %v1837_v38 }
 0x1f1   : > { %1669 = vmatpush3.bf16.msra.mxu1 %v1837_v38 }
 0x1f2   : > { %1670 = vmatprep.subr.bf16.mxu1 %v1838_v39 }
 0x1f5   : > { %1671 = vmatpush3.bf16.msra.mxu1 %v1838_v39 }
 0x2a1   : > { %v1644_v41 = vpop.f32.mrb[16].mxu0 }
 0x2a2   : > { %v829_v42 = vadd.f32 %v1644_v41, %v2105_v40  ;;  %v820_v43 = vpop.f32.mrb[17].mxu0 }
 0x2a3   : > { %v821_v44 = vadd.f32 %v2105_v40, %v820_v43  ;;  %v1645_v45 = vpop.f32.mrb[18].mxu0 }
 0x2a4   : > { %v832_v46 = vadd.f32 %v1645_v45, %v2105_v40  ;;  %v823_v47 = vpop.f32.mrb[19].mxu0  ;;  %v885_v49 = vmax.f32 %v829_v42, 0.0  ;;  %v1701_v45 = vpop.permute.xlu0 %1700 }
 0x2a5   : > { %v824_v48 = vadd.f32 %v2105_v40, %v823_v47  ;;  %v883_v51 = vmax.f32 %v821_v44, 0.0  ;;  %v2143_v44 = vpop.permute.xlu1 %1710 }
 0x2a6   : > { %v886_v50 = vmax.f32 %v832_v46, 0.0 }
 0x2a7   : > { %v884_v52 = vmax.f32 %v824_v48, 0.0 }
 0x2a8   : > { %v1749_v53 = vpack.i.bf16 %v886_v50, %v885_v49  ;;  %v1706_v46 = vpop.permute.xlu0 %1705  ;;  %v355_v50 = vunpack.c.l.bf16 %v1959_v2 }
 0x2a9   : > { %v1754_v54 = vpack.i.bf16 %v884_v52, %v883_v51  ;;  %v1648_v55 = vpop.f32.mrb[20].mxu0  ;;  %v356_v51 = vunpack.c.h.bf16 %v1959_v2  ;;  %v1703_v52 = vunpack.i.h.bf16 %v1701_v45 }
 0x2aa   : > { %v845_v56 = vadd.f32 %v1648_v55, %v2105_v40  ;;  %1750 = vrot.lane.b32.xlu1 %v1749_v53, %s1889_s10  ;;  %v836_v57 = vpop.f32.mrb[21].mxu0  ;;  %v1702_v53 = vunpack.i.l.bf16 %v1701_v45 }
 0x2ab   : > { %v837_v58 = vadd.f32 %v2105_v40, %v836_v57  ;;  %v1649_v59 = vpop.f32.mrb[22].mxu0  ;;  %1755 = vrot.lane.b32.xlu0 %v1754_v54, %s1889_s10  ;;  %v1708_v54 = vunpack.i.h.bf16 %v1706_v46  ;;  %v1707_v57 = vunpack.i.l.bf16 %v1706_v46  ;;  %v1094_v2 = vsel %vm424_vm0, %v356_v51, %v1703_v52 }
 0x2ac   : > { %v848_v60 = vadd.f32 %v1649_v59, %v2105_v40  ;;  %v839_v61 = vpop.f32.mrb[23].mxu0  ;;  %v889_v63 = vmax.f32 %v845_v56, 0.0  ;;  %v2147_v48 = vpop.permute.xlu0 %1715  ;;  %v353_v56 = vunpack.c.l.bf16 %v1957_v1  ;;  %v357_v59 = vunpack.c.l.bf16 %v1961_v3 }
 0x2ad   : > { %v840_v62 = vadd.f32 %v2105_v40, %v839_v61  ;;  %v887_v9 = vmax.f32 %v837_v58, 0.0 }
 0x2ae   : > { %v890_v0 = vmax.f32 %v848_v60, 0.0  ;;  %1765 = vrot.lane.b32.xlu1 %v2065_v12, %s1888_s11  ;;  %v359_v60 = vunpack.c.l.bf16 %v1969_v4 }
 0x2af   : > { %v888_v10 = vmax.f32 %v840_v62, 0.0  ;;  %1760 = vrot.lane.b32.xlu0 %v2067_v14, %s1888_s11 }
 0x2b0   : > { %v1769_v13 = vpack.i.bf16 %v890_v0, %v889_v63  ;;  %v2149_v49 = vpop.permute.xlu0 %1725  ;;  %v360_v63 = vunpack.c.h.bf16 %v1969_v4 }
 0x2b1   : > { %v1774_v15 = vpack.i.bf16 %v888_v10, %v887_v9  ;;  %v1652_v16 = vpop.f32.mrb[24].mxu0  ;;  %v1093_v10 = vsel %vm424_vm0, %v355_v50, %v1702_v53 }
 0x2b2   : > { %v861_v17 = vadd.f32 %v1652_v16, %v2105_v40  ;;  %1770 = vrot.lane.b32.xlu1 %v1769_v13, %s1889_s10  ;;  %v852_v18 = vpop.f32.mrb[25].mxu0  ;;  %v1713_v16 = vunpack.i.h.bf16 %v2143_v44 }
 0x2b3   : > { %v853_v20 = vadd.f32 %v2105_v40, %v852_v18  ;;  %v1653_v22 = vpop.f32.mrb[26].mxu0  ;;  %1775 = vrot.lane.b32.xlu0 %v1774_v15, %s1889_s10  ;;  %v1091_v15 = vsel %vm424_vm0, %v353_v56, %v1707_v57 }
 0x2b4   : > { %v864_v12 = vadd.f32 %v1653_v22, %v2105_v40  ;;  %v855_v11 = vpop.f32.mrb[27].mxu0  ;;  %v893_v25 = vmax.f32 %v861_v17, 0.0  ;;  %v1746_v58 = vpop.permute.xlu0 %1745 }
 0x2b5   : > { %v856_v24 = vadd.f32 %v2105_v40, %v855_v11  ;;  %v891_v26 = vmax.f32 %v853_v20, 0.0 }
 0x2b6   : > { %v894_v14 = vmax.f32 %v864_v12, 0.0  ;;  %1785 = vrot.lane.b32.xlu1 %v2034_v19, %s1887_s24 }
 0x2b7   : > { %v892_v27 = vmax.f32 %v856_v24, 0.0  ;;  %1780 = vrot.lane.b32.xlu0 %v2036_v21, %s1887_s24 }
 0x2b8   : > { %v1789_v28 = vpack.i.bf16 %v894_v14, %v893_v25 }
 0x2b9   : > { %v1794_v29 = vpack.i.bf16 %v892_v27, %v891_v26  ;;  %v1656_v31 = vpop.f32.mrb[28].mxu0  ;;  %v1712_v27 = vunpack.i.l.bf16 %v2143_v44 }
 0x2ba   : > { %v877_v33 = vadd.f32 %v1656_v31, %v2105_v40  ;;  %1790 = vrot.lane.b32.xlu1 %v1789_v28, %s1889_s10  ;;  %v868_v34 = vpop.f32.mrb[29].mxu0 }
 0x2bb   : > { %v869_v23 = vadd.f32 %v2105_v40, %v868_v34  ;;  %v1657_v35 = vpop.f32.mrb[30].mxu0  ;;  %1795 = vrot.lane.b32.xlu0 %v1794_v29, %s1889_s10  ;;  %v1718_v34 = vunpack.i.h.bf16 %v2147_v48  ;;  %v1097_v44 = vsel %vm424_vm0, %v359_v60, %v1712_v27 }
 0x2bc   : > { %v880_v19 = vadd.f32 %v1657_v35, %v2105_v40  ;;  %v871_v36 = vpop.f32.mrb[31].mxu0  ;;  %v897_v38 = vmax.f32 %v877_v33, 0.0  ;;  %v358_v33 = vunpack.c.h.bf16 %v1961_v3  ;;  %v1098_v3 = vsel %vm424_vm0, %v360_v63, %v1713_v16 }
 0x2bd   : > { %v872_v37 = vadd.f32 %v2105_v40, %v871_v36  ;;  %v895_v39 = vmax.f32 %v869_v23, 0.0  ;;  %v2145_v40 = vpop.permute.xlu1 %1720  ;;  %v1717_v23 = vunpack.i.l.bf16 %v2147_v48  ;;  %v1728_v63 = vunpack.i.h.bf16 %v2149_v49 }
 0x2be   : > { %v898_v21 = vmax.f32 %v880_v19, 0.0  ;;  %1805 = vrot.lane.b32.xlu1 %v2075_v30, %s1888_s11  ;;  %v1096_v46 = vsel %vm424_vm0, %v358_v33, %v1718_v34  ;;  %v1723_v57 = vunpack.i.h.bf16 %v2145_v40 }
 0x2bf   : > { %v896_v41 = vmax.f32 %v872_v37, 0.0  ;;  %1800 = vrot.lane.b32.xlu0 %v2077_v32, %s1888_s11  ;;  %v354_v32 = vunpack.c.h.bf16 %v1957_v1 }
 0x2c0   : > { %v1814_v42 = vpack.i.bf16 %v898_v21, %v897_v38  ;;  %v361_v21 = vunpack.c.l.bf16 %v1971_v5 }
 0x2c1   : > { %v1809_v43 = vpack.i.bf16 %v896_v41, %v895_v39  ;;  %v1731_v47 = vpop.permute.xlu1 %1730  ;;  %v1092_v13 = vsel %vm424_vm0, %v354_v32, %v1708_v54  ;;  %v1748_v39 = vunpack.i.h.bf16 %v1746_v58  ;;  %v1747_v41 = vunpack.i.l.bf16 %v1746_v58 }
 0x2c2   : > { %1815 = vrot.lane.b32.xlu1 %v1814_v42, %s1889_s10  ;;  %v1733_v61 = vunpack.i.h.bf16 %v1731_v47  ;;  %v1732_v62 = vunpack.i.l.bf16 %v1731_v47  ;;  %v363_v42 = vunpack.c.l.bf16 %v1977_v6  ;;  %v1095_v47 = vsel %vm424_vm0, %v357_v59, %v1717_v23 }
 0x2c3   : > { %1810 = vrot.lane.b32.xlu0 %v1809_v43, %s1889_s10  ;;  %v364_v43 = vunpack.c.h.bf16 %v1977_v6  ;;  %v1113_v53 = vsel %vm1107_vm2, %v1096_v46, %v1748_v39  ;;  %v1112_v54 = vsel %vm1107_vm2, %v1095_v47, %v1747_v41  ;;  %v1722_v58 = vunpack.i.l.bf16 %v2145_v40 }
 0x2c4   : > { %v1111_v4 = vsel %vm1107_vm2, %v1094_v2, %v1733_v61  ;;  %v1110_v22 = vsel %vm1107_vm2, %v1093_v10, %v1732_v62  ;;  %v362_v62 = vunpack.c.h.bf16 %v1971_v5  ;;  %v365_v40 = vunpack.c.l.bf16 %v1979_v7 }
 0x2c5   : > { %v1736_v30 = vpop.permute.xlu1 %1735  ;;  %v368_v5 = vunpack.c.h.bf16 %v1985_v8 }
 0x2c6   : > { %v1738_v0 = vunpack.i.h.bf16 %v1736_v30  ;;  %v1737_v9 = vunpack.i.l.bf16 %v1736_v30 }
 0x2c8   : > { %v1109_v24 = vsel %vm1107_vm2, %v1092_v13, %v1738_v0  ;;  %v1108_v25 = vsel %vm1107_vm2, %v1091_v15, %v1737_v9  ;;  %v1727_v0 = vunpack.i.l.bf16 %v2149_v49  ;;  %v1101_v49 = vsel %vm424_vm0, %v363_v42, %v1722_v58 }
 0x2c9   : > { %v1741_v55 = vpop.permute.xlu1 %1740 }
 0x2ca   : > { %v1743_v36 = vunpack.i.h.bf16 %v1741_v55  ;;  %v1742_v37 = vunpack.i.l.bf16 %v1741_v55 }
 0x2cc   : > { %v1115_v50 = vsel %vm1107_vm2, %v1098_v3, %v1743_v36  ;;  %v1114_v51 = vsel %vm1107_vm2, %v1097_v44, %v1742_v37  ;;  %v366_v36 = vunpack.c.h.bf16 %v1979_v7 }
 0x31c   : > { %v1751_v1 = vpop.permute.xlu1 %1750 }
 0x31d   : > { %v1753_v17 = vunpack.i.h.bf16 %v1751_v1  ;;  %v1752_v18 = vunpack.i.l.bf16 %v1751_v1  ;;  %v1756_v20 = vpop.permute.xlu0 %1755 }
 0x31e   : > { %v1758_v12 = vunpack.i.h.bf16 %v1756_v20  ;;  %v1757_v11 = vunpack.i.l.bf16 %v1756_v20 }
 0x31f   : > { %v1128_v14 = vsel %vm1124_vm3, %v1111_v4, %v1753_v17  ;;  %v1127_v26 = vsel %vm1124_vm3, %v1110_v22, %v1752_v18  ;;  %v367_v17 = vunpack.c.l.bf16 %v1985_v8  ;;  %v1102_v18 = vsel %vm424_vm0, %v364_v43, %v1723_v57 }
 0x320   : > { %v1126_v28 = vsel %vm1124_vm3, %v1109_v24, %v1758_v12  ;;  %v1125_v29 = vsel %vm1124_vm3, %v1108_v25, %v1757_v11  ;;  %v2172_v31 = vpop.permute.xlu1 %1765  ;;  %v1142_v38 = vpack.c.bf16 %v1128_v14, %v1127_v26  ;;  %v1100_v4 = vsel %vm424_vm0, %v362_v62, %v1728_v63  ;;  %v2238_v62 = vld [vmem:[%s2364_s8] ss:$0 sm:$0xff] }
 0x321   : > { %v1141_v35 = vpack.c.bf16 %v1126_v28, %v1125_v29  ;;  %v1761_v19 = vpop.permute.xlu0 %1760  ;;  %v1768_v10 = vunpack.i.h.bf16 %v2172_v31  ;;  %v1767_v13 = vunpack.i.l.bf16 %v2172_v31  ;;  %v1099_v22 = vsel %vm424_vm0, %v361_v21, %v1727_v0 }
 0x322   : > { %v1763_v15 = vunpack.i.h.bf16 %v1761_v19  ;;  %v1762_v16 = vunpack.i.l.bf16 %v1761_v19 }
 0x323   : > { %1672 = vmatprep.mubr.msk.bf16.mxu1 %vm1212_vm4, %v1141_v35  ;;  %v1119_v25 = vsel %vm1107_vm2, %v1102_v18, %v1768_v10  ;;  %v1118_v14 = vsel %vm1107_vm2, %v1101_v49, %v1767_v13 }
 0x324   : > { %v1771_v45 = vpop.permute.xlu1 %1770  ;;  %1673 = vmatmul.mubr.msk.bf16.vlgmr.msra.gmra.mrb[16].mxu1 %vm1212_vm4, %v1142_v38  ;;  %v1117_v27 = vsel %vm1107_vm2, %v1100_v4, %v1763_v15  ;;  %v1116_v28 = vsel %vm1107_vm2, %v1099_v22, %v1762_v16  ;;  %v1398_v16 = vlaneseq }
 0x325   : > { %v1773_v48 = vunpack.i.h.bf16 %v1771_v45  ;;  %v1772_v30 = vunpack.i.l.bf16 %v1771_v45  ;;  %v1776_v32 = vpop.permute.xlu0 %1775 }
 0x326   : > { %v1778_v52 = vunpack.i.h.bf16 %v1776_v32  ;;  %v1777_v6 = vunpack.i.l.bf16 %v1776_v32 }
 0x327   : > { %v1132_v55 = vsel %vm1124_vm3, %v1115_v50, %v1773_v48  ;;  %v1131_v56 = vsel %vm1124_vm3, %v1114_v51, %v1772_v30 }
 0x328   : > { %v1130_v59 = vsel %vm1124_vm3, %v1113_v53, %v1778_v52  ;;  %v1129_v60 = vsel %vm1124_vm3, %v1112_v54, %v1777_v6  ;;  %v1786_v61 = vpop.permute.xlu1 %1785  ;;  %v1144_v1 = vpack.c.bf16 %v1132_v55, %v1131_v56 }
 0x329   : > { %v1143_v9 = vpack.c.bf16 %v1130_v59, %v1129_v60  ;;  %v1781_v2 = vpop.permute.xlu0 %1780  ;;  %v1788_v33 = vunpack.i.h.bf16 %v1786_v61  ;;  %v1787_v34 = vunpack.i.l.bf16 %v1786_v61 }
 0x32a   : > { %v1783_v37 = vunpack.i.h.bf16 %v1781_v2  ;;  %v1782_v38 = vunpack.i.l.bf16 %v1781_v2 }
 0x32b   : > { %1676 = vmatprep.mubr.msk.bf16.mxu1 %vm1212_vm4, %v1143_v9  ;;  %v1106_v45 = vsel %vm424_vm0, %v368_v5, %v1788_v33  ;;  %v1105_v46 = vsel %vm424_vm0, %v367_v17, %v1787_v34 }
 0x32c   : > { %v1791_v20 = vpop.permute.xlu1 %1790  ;;  %1677 = vmatmul.mubr.msk.bf16.gmra.mrb[20].mxu1 %vm1212_vm4, %v1144_v1  ;;  %v1104_v7 = vsel %vm424_vm0, %v366_v36, %v1783_v37  ;;  %v1103_v48 = vsel %vm424_vm0, %v365_v40, %v1782_v38 }
 0x32d   : > { %v1793_v12 = vunpack.i.h.bf16 %v1791_v20  ;;  %v1792_v11 = vunpack.i.l.bf16 %v1791_v20  ;;  %v1796_v24 = vpop.permute.xlu0 %1795 }
 0x32e   : > { %v1798_v26 = vunpack.i.h.bf16 %v1796_v24  ;;  %v1797_v8 = vunpack.i.l.bf16 %v1796_v24 }
 0x32f   : > { %v1136_v29 = vsel %vm1124_vm3, %v1119_v25, %v1793_v12  ;;  %v1135_v31 = vsel %vm1124_vm3, %v1118_v14, %v1792_v11  ;;  %v2258_v11 = vand.u32 127, %v1398_v16 }
 0x330   : > { %v1133_v23 = vsel %vm1124_vm3, %v1116_v28, %v1797_v8  ;;  %v1134_v35 = vsel %vm1124_vm3, %v1117_v27, %v1798_v26  ;;  %v1806_v19 = vpop.permute.xlu1 %1805  ;;  %v1146_v41 = vpack.c.bf16 %v1136_v29, %v1135_v31 }
 0x331   : > { %v1145_v21 = vpack.c.bf16 %v1134_v35, %v1133_v23  ;;  %v1801_v39 = vpop.permute.xlu0 %1800  ;;  %v1808_v42 = vunpack.i.h.bf16 %v1806_v19  ;;  %v1807_v43 = vunpack.i.l.bf16 %v1806_v19  ;;  %vm1400_vm5 = vcmp.lt.s32.totalorder %v2258_v11, 4 }
 0x332   : > { %v1803_v3 = vunpack.i.h.bf16 %v1801_v39  ;;  %v1802_v44 = vunpack.i.l.bf16 %v1801_v39 }
 0x333   : > { %1680 = vmatprep.mubr.msk.bf16.mxu1 %vm1212_vm4, %v1145_v21  ;;  %v1123_v51 = vsel %vm1107_vm2, %v1106_v45, %v1808_v42  ;;  %v1122_v52 = vsel %vm1107_vm2, %v1105_v46, %v1807_v43 }
 0x334   : > { %v1816_v47 = vpop.permute.xlu1 %1815  ;;  %1681 = vmatmul.mubr.msk.bf16.gmra.mrb[24].mxu1 %vm1212_vm4, %v1146_v41  ;;  %v1120_v54 = vsel %vm1107_vm2, %v1103_v48, %v1802_v44  ;;  %v1121_v55 = vsel %vm1107_vm2, %v1104_v7, %v1803_v3 }
 0x335   : > { %v1818_v30 = vunpack.i.h.bf16 %v1816_v47  ;;  %v1817_v32 = vunpack.i.l.bf16 %v1816_v47  ;;  %v1811_v50 = vpop.permute.xlu0 %1810 }
 0x336   : > { %v1813_v6 = vunpack.i.h.bf16 %v1811_v50  ;;  %v1812_v53 = vunpack.i.l.bf16 %v1811_v50 }
 0x337   : > { %v1140_v56 = vsel %vm1124_vm3, %v1123_v51, %v1818_v30  ;;  %v1139_v57 = vsel %vm1124_vm3, %v1122_v52, %v1817_v32 }
 0x338   : > { %v1137_v58 = vsel %vm1124_vm3, %v1120_v54, %v1812_v53  ;;  %v1138_v59 = vsel %vm1124_vm3, %v1121_v55, %v1813_v6  ;;  %v1148_v61 = vpack.c.bf16 %v1140_v56, %v1139_v57 }
 0x339   : > { %v1147_v60 = vpack.c.bf16 %v1138_v59, %v1137_v58 }
 0x33b   : > { %1684 = vmatprep.mubr.msk.bf16.mxu1 %vm1212_vm4, %v1147_v60 }
 0x33c   : > { %1685 = vmatmul.mubr.msk.bf16.gmra.mrb[28].mxu1 %vm1212_vm4, %v1148_v61 }
 0x3f7   : > { %v1674_v63 = vpop.f32.mrb[16].mxu1 }
 0x3f8   : > { %v1280_v0 = vadd.f32 %v1674_v63, %v2238_v62  ;;  %v1271_v9 = vpop.f32.mrb[17].mxu1 }
 0x3f9   : > { %v1272_v2 = vadd.f32 %v2238_v62, %v1271_v9  ;;  %v1675_v10 = vpop.f32.mrb[18].mxu1 }
 0x3fa   : > { %1847 = vtanh.f32 %v1280_v0  ;;  %v1283_v13 = vadd.f32 %v1675_v10, %v2238_v62  ;;  %v1274_v1 = vpop.f32.mrb[19].mxu1 }
 0x3fb   : > { %1849 = vtanh.f32 %v1272_v2  ;;  %v1275_v40 = vadd.f32 %v2238_v62, %v1274_v1 }
 0x3fc   : > { %1851 = vtanh.f32 %v1283_v13 }
 0x3fd   : > { %1853 = vtanh.f32 %v1275_v40 }
 0x3ff   : > { %v1678_v15 = vpop.f32.mrb[20].mxu1 }
 0x400   : > { %v2245_v17 = vadd.f32 %v1678_v15, %v2238_v62  ;;  %v1287_v5 = vpop.f32.mrb[21].mxu1 }
 0x401   : > { %v2248_v18 = vadd.f32 %v2238_v62, %v1287_v5  ;;  %v1679_v49 = vpop.f32.mrb[22].mxu1 }
 0x402   : > { %1855 = vtanh.f32 %v2245_v17  ;;  %v2252_v20 = vadd.f32 %v1679_v49, %v2238_v62  ;;  %v1290_v4 = vpop.f32.mrb[23].mxu1 }
 0x403   : > { %1857 = vtanh.f32 %v2248_v18  ;;  %v2256_v22 = vadd.f32 %v2238_v62, %v1290_v4 }
 0x404   : > { %v1848_v12 = vpop.eup %1847  ;;  %1859 = vtanh.f32 %v2252_v20 }
 0x405   : > { %v1850_v24 = vpop.eup %1849  ;;  %v1352_v25 = vadd.f32 1.0, %v1848_v12  ;;  %1861 = vtanh.f32 %v2256_v22 }
 0x406   : > { %v1852_v14 = vpop.eup %1851  ;;  %v1350_v26 = vadd.f32 1.0, %v1850_v24 }
 0x407   : > { %v1854_v8 = vpop.eup %1853  ;;  %v1368_v27 = vmul.f32 3.5, %v1352_v25  ;;  %v1353_v28 = vadd.f32 1.0, %v1852_v14  ;;  %v1682_v29 = vpop.f32.mrb[24].mxu1 }
 0x408   : > { %v1366_v31 = vmul.f32 3.5, %v1350_v26  ;;  %v1351_v33 = vadd.f32 1.0, %v1854_v8  ;;  %v2265_v34 = vadd.f32 %v1682_v29, %v2238_v62  ;;  %v1303_v23 = vpop.f32.mrb[25].mxu1 }
 0x409   : > { %v1384_v35 = vadd.f32 -5.0, %v1368_v27  ;;  %v1369_v19 = vmul.f32 3.5, %v1353_v28  ;;  %v2273_v36 = vadd.f32 %v2238_v62, %v1303_v23  ;;  %v1683_v37 = vpop.f32.mrb[26].mxu1 }
 0x40a   : > { %v1382_v38 = vadd.f32 -5.0, %v1366_v31  ;;  %v1367_v21 = vmul.f32 3.5, %v1351_v33  ;;  %1863 = vtanh.f32 %v2265_v34  ;;  %v2277_v39 = vadd.f32 %v1683_v37, %v2238_v62  ;;  %v1306_v41 = vpop.f32.mrb[27].mxu1 }
 0x40b   : > { %v1403_v42 = vsel %vm1400_vm5, %v1280_v0, %v1384_v35  ;;  %v1385_v43 = vadd.f32 -5.0, %v1369_v19  ;;  %1865 = vtanh.f32 %v2273_v36  ;;  %v2283_v3 = vadd.f32 %v2238_v62, %v1306_v41 }
 0x40c   : > { %v1856_v44 = vpop.eup %1855  ;;  %1419 = vst [vmem:[%s2270_s16 + $0x10] sm:$0xff] %v1403_v42  ;;  %v1401_v45 = vsel %vm1400_vm5, %v1272_v2, %v1382_v38  ;;  %v1383_v46 = vadd.f32 -5.0, %v1367_v21  ;;  %1867 = vtanh.f32 %v2277_v39 }
 0x40d   : > { %v1858_v47 = vpop.eup %1857  ;;  %1417 = vst [vmem:[%s2270_s16] sm:$0xff] %v1401_v45  ;;  %v1404_v7 = vsel %vm1400_vm5, %v1283_v13, %v1385_v43  ;;  %v1356_v48 = vadd.f32 1.0, %v1856_v44  ;;  %1869 = vtanh.f32 %v2283_v3 }
 0x40e   : > { %v1860_v30 = vpop.eup %1859  ;;  %1420 = vst [vmem:[%s2270_s16 + $0x18] sm:$0xff] %v1404_v7  ;;  %v1402_v32 = vsel %vm1400_vm5, %v1275_v40, %v1383_v46  ;;  %v1354_v50 = vadd.f32 1.0, %v1858_v47 }
 0x40f   : > { %v1862_v51 = vpop.eup %1861  ;;  %1418 = vst [vmem:[%s2270_s16 + $0x8] sm:$0xff] %v1402_v32  ;;  %v1372_v52 = vmul.f32 3.5, %v1356_v48  ;;  %v1357_v6 = vadd.f32 1.0, %v1860_v30  ;;  %v1686_v53 = vpop.f32.mrb[28].mxu1 }
 0x410   : > { %v1370_v54 = vmul.f32 3.5, %v1354_v50  ;;  %v1355_v55 = vadd.f32 1.0, %v1862_v51  ;;  %v2298_v56 = vadd.f32 %v1686_v53, %v2238_v62  ;;  %v1319_v57 = vpop.f32.mrb[29].mxu1 }
 0x411   : > { %v1388_v58 = vadd.f32 -5.0, %v1372_v52  ;;  %v1373_v59 = vmul.f32 3.5, %v1357_v6  ;;  %v2301_v60 = vadd.f32 %v2238_v62, %v1319_v57  ;;  %v1687_v61 = vpop.f32.mrb[30].mxu1 }
 0x412   : > { %v1386_v63 = vadd.f32 -5.0, %v1370_v54  ;;  %v1371_v0 = vmul.f32 3.5, %v1355_v55  ;;  %1871 = vtanh.f32 %v2298_v56  ;;  %v1331_v9 = vadd.f32 %v1687_v61, %v2238_v62  ;;  %v1322_v2 = vpop.f32.mrb[31].mxu1 }
 0x413   : > { %v1407_v10 = vsel %vm1400_vm5, %v2245_v17, %v1388_v58  ;;  %v1389_v13 = vadd.f32 -5.0, %v1373_v59  ;;  %1873 = vtanh.f32 %v2301_v60  ;;  %v1323_v1 = vadd.f32 %v2238_v62, %v1322_v2 }
 0x414   : > { %v1864_v40 = vpop.eup %1863  ;;  %1423 = vst [vmem:[%s2270_s16 + $0x30] sm:$0xff] %v1407_v10  ;;  %v1405_v15 = vsel %vm1400_vm5, %v2248_v18, %v1386_v63  ;;  %v1387_v16 = vadd.f32 -5.0, %v1371_v0  ;;  %1875 = vtanh.f32 %v1331_v9 }
 0x415   : > { %v1866_v5 = vpop.eup %1865  ;;  %1421 = vst [vmem:[%s2270_s16 + $0x20] sm:$0xff] %v1405_v15  ;;  %v1408_v17 = vsel %vm1400_vm5, %v2252_v20, %v1389_v13  ;;  %v1360_v49 = vadd.f32 1.0, %v1864_v40  ;;  %1877 = vtanh.f32 %v1323_v1 }
 0x416   : > { %v1868_v4 = vpop.eup %1867  ;;  %1424 = vst [vmem:[%s2270_s16 + $0x38] sm:$0xff] %v1408_v17  ;;  %v1406_v62 = vsel %vm1400_vm5, %v2256_v22, %v1387_v16  ;;  %v1358_v12 = vadd.f32 1.0, %v1866_v5 }
 0x417   : > { %v1870_v24 = vpop.eup %1869  ;;  %1422 = vst [vmem:[%s2270_s16 + $0x28] sm:$0xff] %v1406_v62  ;;  %v1376_v18 = vmul.f32 3.5, %v1360_v49  ;;  %v1361_v25 = vadd.f32 1.0, %v1868_v4 }
 0x418   : > { %v1374_v14 = vmul.f32 3.5, %v1358_v12  ;;  %v1359_v26 = vadd.f32 1.0, %v1870_v24 }
 0x419   : > { %v1392_v8 = vadd.f32 -5.0, %v1376_v18  ;;  %v1377_v20 = vmul.f32 3.5, %v1361_v25 }
 0x41a   : > { %v1390_v27 = vadd.f32 -5.0, %v1374_v14  ;;  %v1375_v28 = vmul.f32 3.5, %v1359_v26 }
 0x41b   : > { %v1411_v29 = vsel %vm1400_vm5, %v2265_v34, %v1392_v8  ;;  %v1393_v31 = vadd.f32 -5.0, %v1377_v20 }
 0x41c   : > { %v1872_v22 = vpop.eup %1871  ;;  %1427 = vst [vmem:[%s2270_s16 + $0x50] sm:$0xff] %v1411_v29  ;;  %v1409_v33 = vsel %vm1400_vm5, %v2273_v36, %v1390_v27  ;;  %v1391_v23 = vadd.f32 -5.0, %v1375_v28 }
 0x41d   : > { %v1874_v35 = vpop.eup %1873  ;;  %1425 = vst [vmem:[%s2270_s16 + $0x40] sm:$0xff] %v1409_v33  ;;  %v1412_v19 = vsel %vm1400_vm5, %v2277_v39, %v1393_v31  ;;  %v1364_v37 = vadd.f32 1.0, %v1872_v22 }
 0x41e   : > { %v1876_v38 = vpop.eup %1875  ;;  %1428 = vst [vmem:[%s2270_s16 + $0x58] sm:$0xff] %v1412_v19  ;;  %v1410_v34 = vsel %vm1400_vm5, %v2283_v3, %v1391_v23  ;;  %v1362_v21 = vadd.f32 1.0, %v1874_v35 }
 0x41f   : > { %v1878_v41 = vpop.eup %1877  ;;  %1426 = vst [vmem:[%s2270_s16 + $0x48] sm:$0xff] %v1410_v34  ;;  %v1380_v36 = vmul.f32 3.5, %v1364_v37  ;;  %v1365_v42 = vadd.f32 1.0, %v1876_v38 }
 0x420   : > { %v1378_v43 = vmul.f32 3.5, %v1362_v21  ;;  %v1363_v44 = vadd.f32 1.0, %v1878_v41 }
 0x421   : > { %v1396_v45 = vadd.f32 -5.0, %v1380_v36  ;;  %v1381_v39 = vmul.f32 3.5, %v1365_v42 }
 0x422   : > { %v1394_v46 = vadd.f32 -5.0, %v1378_v43  ;;  %v1379_v47 = vmul.f32 3.5, %v1363_v44 }
 0x423   : > { %v1415_v7 = vsel %vm1400_vm5, %v2298_v56, %v1396_v45  ;;  %v1397_v48 = vadd.f32 -5.0, %v1381_v39 }
 0x424   : > { %1431 = vst [vmem:[%s2270_s16 + $0x70] sm:$0xff] %v1415_v7  ;;  %v1413_v3 = vsel %vm1400_vm5, %v2301_v60, %v1394_v46  ;;  %v1395_v30 = vadd.f32 -5.0, %v1379_v47 }
 0x425   : > { %1429 = vst [vmem:[%s2270_s16 + $0x60] sm:$0xff] %v1413_v3  ;;  %v1416_v32 = vsel %vm1400_vm5, %v1331_v9, %v1397_v48 }
 0x426   : > { %1432 = vst [vmem:[%s2270_s16 + $0x78] sm:$0xff] %v1416_v32  ;;  %v1414_v50 = vsel %vm1400_vm5, %v1323_v1, %v1395_v30 }
 0x427   : > { %1430 = vst [vmem:[%s2270_s16 + $0x68] sm:$0xff] %v1414_v50 }
 0x428 PF: > { %s19_s30 = sadd.s32 1, %s1885_s30  }
 0x429   : > { %p16_p4 = scmp.ge.s32.totalorder %s19_s30, 4  }
 0x42b   :  { %18 = sbr.rel (!%p16_p4) target bundleno = 1 (0x1), region = 86 }

</bundles_post_ra>
